<compile_context>
chip_gen: v6e
topology: v6e:2x2x1
jax: 0.10.0
libtpu: 0.0.40
codegen_flags: <defaults>
</compile_context>

<pallas_src>
from functools import partial

import jax
import jax.numpy as jnp
from jax.experimental import pallas as pl
from jax.experimental.pallas import tpu as pltpu


# ---------------------------------------------------------------------------
# Pallas kernel: both 3-layer MLPs fused; 5 packed inputs, 1 packed output.
# ---------------------------------------------------------------------------
def _fused_critic_kernel(x_ref, w1_ref, w2_ref, w3_ref, b_ref, o_ref):
    H = w2_ref.shape[-1]  # hidden width (256)

    # Shared lane-dense input slab [B, 128]; cast once to bf16 for the MXU.
    x = x_ref[...].astype(jnp.bfloat16)

    # Bias slab layout: [ B1 (2H) | B2 (2H) | B3 (out_pad) ]  (128-aligned cuts)
    b1 = b_ref[:, 0:2 * H]
    b2 = b_ref[:, 2 * H:4 * H]
    b3 = b_ref[:, 4 * H:]

    # Layer 1: one [B,128]x[128,2H] matmul covers both branches (N-concat
    # weights), then one bias-add + tanh over [B,2H].
    h1 = jnp.tanh(
        jnp.dot(x, w1_ref[...], preferred_element_type=jnp.float32) + b1)
    h1 = h1.astype(jnp.bfloat16)

    # Layer 2: branch weights differ -> two independent [B,H]x[H,H] matmuls
    # (LLO interleaves them), but a single fused bias+tanh on the
    # lane-concatenated [B,2H] result.
    h2a = jnp.dot(h1[:, :H], w2_ref[0], preferred_element_type=jnp.float32)
    h2v = jnp.dot(h1[:, H:], w2_ref[1], preferred_element_type=jnp.float32)
    h2 = jnp.tanh(jnp.concatenate([h2a, h2v], axis=-1) + b2).astype(jnp.bfloat16)

    # Layer 3: K-stacked weights -> one [B,2H]x[2H,out_pad] matmul; the
    # cross-branch accumulation happens inside the MXU (disjoint column
    # supports: logits lanes vs. the single value lane).
    o = jnp.dot(h2, w3_ref[...], preferred_element_type=jnp.float32) + b3
    o_ref[...] = o.astype(o_ref.dtype)


def _round_up(x, m):
    return ((x + m - 1) // m) * m


@partial(jax.jit, static_argnames=("num_outputs",))
def fused_forward(own_obs, obs_flat, packed, num_outputs):
    """One jitted launch: pack input slab, run fused kernel, slice outputs."""
    B, own = own_obs.shape
    flat = obs_flat.shape[1]
    d_pad = packed["w1"].shape[0]
    out_pad = packed["w3"].shape[1]

    # Build the shared lane-dense slab with one concat + one pad.
    b_pad = _round_up(max(B, 1), 8)
    x = jnp.concatenate(
        [own_obs.astype(jnp.float32), obs_flat.astype(jnp.float32)], axis=1)
    x = jnp.pad(x, ((0, b_pad - B), (0, d_pad - (own + flat))))

    vmem = pl.BlockSpec(memory_space=pltpu.MemorySpace.VMEM)
    out = pl.pallas_call(
        _fused_critic_kernel,
        out_shape=jax.ShapeDtypeStruct((b_pad, out_pad), jnp.float32),
        in_specs=[vmem] * 5,
        out_specs=vmem,
    )(x, packed["w1"], packed["w2"], packed["w3"], packed["biases"])

    logits = out[:B, :num_outputs]
    value = out[:B, num_outputs]
    return logits, value


# ---------------------------------------------------------------------------
# Parameter construction (deterministic, synthetic — no checkpoint loading)
# ---------------------------------------------------------------------------
def make_fcn_params(key, d_in, hidden, d_out, scale=0.05):
    ks = jax.random.split(key, 6)
    return {
        "w1": scale * jax.random.normal(ks[0], (d_in, hidden), jnp.float32),
        "b1": scale * jax.random.normal(ks[1], (1, hidden), jnp.float32),
        "w2": scale * jax.random.normal(ks[2], (hidden, hidden), jnp.float32),
        "b2": scale * jax.random.normal(ks[3], (1, hidden), jnp.float32),
        "w3": scale * jax.random.normal(ks[4], (hidden, d_out), jnp.float32),
        "b3": scale * jax.random.normal(ks[5], (1, d_out), jnp.float32),
    }


def _pack_params(ap, vp, own, flat, num_outputs, hidden):
    """Pad/pack both weight sets into 4 fused bf16 slabs + 1 f32 bias slab."""
    H = hidden
    d_pad = max(128, _round_up(own + flat, 128))
    out_pad = max(128, _round_up(num_outputs + 1, 128))
    assert num_outputs + 1 <= out_pad
    bf16 = jnp.bfloat16

    # W1 [d_pad, 2H]: action branch reads slab lanes [0,own) -> output lanes
    # [0,H); value branch reads lanes [own,own+flat) -> output lanes [H,2H).
    w1 = jnp.zeros((d_pad, 2 * H), bf16)
    w1 = w1.at[:own, :H].set(ap["w1"].astype(bf16))
    w1 = w1.at[own:own + flat, H:].set(vp["w1"].astype(bf16))

    # W2 [2, H, H]: slot 0 = action w2, slot 1 = value w2 (indexed in-kernel).
    w2 = jnp.stack([ap["w2"], vp["w2"]]).astype(bf16)

    # W3 [2H, out_pad]: K-stacked; disjoint zero-padded column supports
    # (logit lanes vs. the single value lane) — required for correctness.
    w3 = jnp.zeros((2 * H, out_pad), bf16)
    w3 = w3.at[:H, :num_outputs].set(ap["w3"].astype(bf16))
    w3 = w3.at[H:, num_outputs:num_outputs + 1].set(vp["w3"].astype(bf16))

    # Bias slab [1, 2H + 2H + out_pad] f32: B1(a|v) | B2(a|v) | B3(packed).
    b3 = jnp.zeros((1, out_pad), jnp.float32)
    b3 = b3.at[:, :num_outputs].set(ap["b3"])
    b3 = b3.at[:, num_outputs:num_outputs + 1].set(vp["b3"])
    biases = jnp.concatenate(
        [ap["b1"], vp["b1"], ap["b2"], vp["b2"], b3], axis=1
    ).astype(jnp.float32)

    return {"w1": w1, "w2": w2, "w3": w3, "biases": biases}


class CentralizedCriticModelPallas:
    """JAX/Pallas re-implementation of CustomTorchCentralizedCriticModel.

    forward() mirrors the torch module (returns action logits + state, caches
    obs_flat); value_function() returns the centralized value reshaped to [-1].
    Both heads are computed by one fused, jitted Pallas launch.
    """

    def __init__(self, own_obs_size, obs_flat_size, num_outputs, hidden=256, seed=0):
        key = jax.random.PRNGKey(seed)
        k_act, k_val = jax.random.split(key)
        self.action_params = make_fcn_params(k_act, own_obs_size, hidden, num_outputs)
        self.value_params = make_fcn_params(k_val, obs_flat_size, hidden, 1)
        self.num_outputs = num_outputs
        self._packed = _pack_params(self.action_params, self.value_params,
                                    own_obs_size, obs_flat_size, num_outputs, hidden)
        self._model_in = None
        self._value_out = None

    def forward(self, input_dict, state, seq_lens):
        self._model_in = [input_dict["obs_flat"], state, seq_lens]
        logits, value = fused_forward(
            input_dict["obs"]["own_obs"], input_dict["obs_flat"],
            self._packed, num_outputs=self.num_outputs)
        self._value_out = value
        return logits, state

    def value_function(self):
        return jnp.reshape(self._value_out, (-1,))


# ---------------------------------------------------------------------------
# Pure-JAX reference (same bf16-weight / f32-accumulate numerics) for checks.
# Note: bf16 weights/inputs intentionally do not bit-match an fp32 torch
# FullyConnectedNetwork; 2e-3 tolerance is the intended contract.
# ---------------------------------------------------------------------------
def _mlp3_ref(x, p):
    w1 = p["w1"].astype(jnp.bfloat16)
    w2 = p["w2"].astype(jnp.bfloat16)
    w3 = p["w3"].astype(jnp.bfloat16)
    h1 = jnp.tanh(jnp.dot(x.astype(jnp.bfloat16), w1,
                          preferred_element_type=jnp.float32) + p["b1"])
    h2 = jnp.tanh(jnp.dot(h1.astype(jnp.bfloat16), w2,
                          preferred_element_type=jnp.float32) + p["b2"])
    return jnp.dot(h2.astype(jnp.bfloat16), w3,
                   preferred_element_type=jnp.float32) + p["b3"]


if __name__ == "__main__":
    # Small synthetic shapes consistent with the centralized-critic setup:
    #   own_obs: [B, 16]; obs_flat = concat(own, opp_obs[12], opp_act[4]) = [B, 32]
    B = 8
    OWN_OBS_VEC_SIZE = 16
    OPP_OBS_SIZE = 12
    OPP_ACT_SIZE = 4
    OBS_FLAT_SIZE = OWN_OBS_VEC_SIZE + OPP_OBS_SIZE + OPP_ACT_SIZE
    NUM_OUTPUTS = 8
    HIDDEN = 256  # RLlib FullyConnectedNetwork default hiddens=[256, 256]

    key = jax.random.PRNGKey(0)
    k_own, k_opp, k_act = jax.random.split(key, 3)
    own_obs = jax.random.normal(k_own, (B, OWN_OBS_VEC_SIZE), jnp.float32)
    opponent_obs = jax.random.normal(k_opp, (B, OPP_OBS_SIZE), jnp.float32)
    opponent_action = jax.random.normal(k_act, (B, OPP_ACT_SIZE), jnp.float32)
    obs_flat = jnp.concatenate([own_obs, opponent_obs, opponent_action], axis=-1)

    input_dict = {
        "obs": {"own_obs": own_obs, "opponent_obs": opponent_obs,
                "opponent_action": opponent_action},
        "obs_flat": obs_flat,
    }

    model = CentralizedCriticModelPallas(
        OWN_OBS_VEC_SIZE, OBS_FLAT_SIZE, NUM_OUTPUTS, hidden=HIDDEN, seed=0
    )

    logits, state = model.forward(input_dict, state=[], seq_lens=None)
    values = model.value_function()
    jax.block_until_ready(logits)
    jax.block_until_ready(values)

    # Verify against pure-JAX reference (identical bf16/f32 mixed precision).
    logits_ref = _mlp3_ref(own_obs, model.action_params)
    values_ref = jnp.reshape(_mlp3_ref(obs_flat, model.value_params), (-1,))
    assert logits.shape == (B, NUM_OUTPUTS)
    assert values.shape == (B,)
    assert jnp.allclose(logits, logits_ref, atol=2e-3, rtol=2e-3)
    assert jnp.allclose(values, values_ref, atol=2e-3, rtol=2e-3)

    print("KERNEL_OK")
</pallas_src>

<mosaic_0001>
module attributes {stable_mosaic.version = 11 : i64} {
  func.func @_fused_critic_kernel(%arg0: memref<8x128xf32, #tpu.memory_space<vmem>>, %arg1: memref<128x512xbf16, #tpu.memory_space<vmem>>, %arg2: memref<2x256x256xbf16, #tpu.memory_space<vmem>>, %arg3: memref<512x128xbf16, #tpu.memory_space<vmem>>, %arg4: memref<1x1152xf32, #tpu.memory_space<vmem>>, %arg5: memref<8x128xf32, #tpu.memory_space<vmem>>) attributes {dimension_semantics = [], scalar_prefetch = 0 : i64, scratch_operands = 0 : i64, tpu.core_type = #tpu.core_type<tc>} {
    %c0 = arith.constant 0 : index
    %c0_0 = arith.constant 0 : index
    %0 = vector.load %arg0[%c0, %c0_0] : memref<8x128xf32, #tpu.memory_space<vmem>>, vector<8x128xf32>
    %1 = arith.truncf %0 : vector<8x128xf32> to vector<8x128xbf16>
    %c0_1 = arith.constant 0 : index
    %c0_2 = arith.constant 0 : index
    %2 = vector.load %arg4[%c0_1, %c0_2] : memref<1x1152xf32, #tpu.memory_space<vmem>>, vector<1x512xf32>
    %c0_3 = arith.constant 0 : index
    %c512 = arith.constant 512 : index
    %3 = vector.load %arg4[%c0_3, %c512] : memref<1x1152xf32, #tpu.memory_space<vmem>>, vector<1x512xf32>
    %c0_4 = arith.constant 0 : index
    %c1024 = arith.constant 1024 : index
    %4 = vector.load %arg4[%c0_4, %c1024] : memref<1x1152xf32, #tpu.memory_space<vmem>>, vector<1x128xf32>
    %c0_5 = arith.constant 0 : index
    %c0_6 = arith.constant 0 : index
    %5 = vector.load %arg1[%c0_5, %c0_6] : memref<128x512xbf16, #tpu.memory_space<vmem>>, vector<128x512xbf16>
    %cst = arith.constant dense<0.000000e+00> : vector<8x512xf32>
    %6 = tpu.matmul %1, %5, %cst {dimension_numbers = #tpu.dot_dimension_numbers<[1], [0], [0], [1], [0, 0, 1, 1], [], []>} : vector<8x128xbf16>, vector<128x512xbf16>, vector<8x512xf32> -> vector<8x512xf32>
    %7 = vector.broadcast %2 : vector<1x512xf32> to vector<8x512xf32>
    %8 = arith.addf %6, %7 : vector<8x512xf32>
    %9 = math.tanh %8 : vector<8x512xf32>
    %10 = arith.truncf %9 : vector<8x512xf32> to vector<8x512xbf16>
    %11 = vector.extract_strided_slice %10 {offsets = [0, 0], sizes = [8, 256], strides = [1, 1]} : vector<8x512xbf16> to vector<8x256xbf16>
    %c0_7 = arith.constant 0 : index
    %c0_8 = arith.constant 0 : index
    %c0_9 = arith.constant 0 : index
    %12 = vector.load %arg2[%c0_7, %c0_8, %c0_9] : memref<2x256x256xbf16, #tpu.memory_space<vmem>>, vector<1x256x256xbf16>
    %13 = vector.shape_cast %12 : vector<1x256x256xbf16> to vector<256x256xbf16>
    %cst_10 = arith.constant dense<0.000000e+00> : vector<8x256xf32>
    %14 = tpu.matmul %11, %13, %cst_10 {dimension_numbers = #tpu.dot_dimension_numbers<[1], [0], [0], [1], [0, 0, 1, 1], [], []>} : vector<8x256xbf16>, vector<256x256xbf16>, vector<8x256xf32> -> vector<8x256xf32>
    %15 = vector.extract_strided_slice %10 {offsets = [0, 256], sizes = [8, 256], strides = [1, 1]} : vector<8x512xbf16> to vector<8x256xbf16>
    %c1 = arith.constant 1 : index
    %c0_11 = arith.constant 0 : index
    %c0_12 = arith.constant 0 : index
    %16 = vector.load %arg2[%c1, %c0_11, %c0_12] : memref<2x256x256xbf16, #tpu.memory_space<vmem>>, vector<1x256x256xbf16>
    %17 = vector.shape_cast %16 : vector<1x256x256xbf16> to vector<256x256xbf16>
    %cst_13 = arith.constant dense<0.000000e+00> : vector<8x256xf32>
    %18 = tpu.matmul %15, %17, %cst_13 {dimension_numbers = #tpu.dot_dimension_numbers<[1], [0], [0], [1], [0, 0, 1, 1], [], []>} : vector<8x256xbf16>, vector<256x256xbf16>, vector<8x256xf32> -> vector<8x256xf32>
    %19 = tpu.concatenate %14, %18 in 1 : vector<8x256xf32>, vector<8x256xf32> -> vector<8x512xf32>
    %20 = vector.broadcast %3 : vector<1x512xf32> to vector<8x512xf32>
    %21 = arith.addf %19, %20 : vector<8x512xf32>
    %22 = math.tanh %21 : vector<8x512xf32>
    %23 = arith.truncf %22 : vector<8x512xf32> to vector<8x512xbf16>
    %c0_14 = arith.constant 0 : index
    %c0_15 = arith.constant 0 : index
    %24 = vector.load %arg3[%c0_14, %c0_15] : memref<512x128xbf16, #tpu.memory_space<vmem>>, vector<512x128xbf16>
    %cst_16 = arith.constant dense<0.000000e+00> : vector<8x128xf32>
    %25 = tpu.matmul %23, %24, %cst_16 {dimension_numbers = #tpu.dot_dimension_numbers<[1], [0], [0], [1], [0, 0, 1, 1], [], []>} : vector<8x512xbf16>, vector<512x128xbf16>, vector<8x128xf32> -> vector<8x128xf32>
    %26 = vector.broadcast %4 : vector<1x128xf32> to vector<8x128xf32>
    %27 = arith.addf %25, %26 : vector<8x128xf32>
    %c0_17 = arith.constant 0 : index
    %c0_18 = arith.constant 0 : index
    %28 = vector.load %arg5[%c0_17, %c0_18] : memref<8x128xf32, #tpu.memory_space<vmem>>, vector<8x128xf32>
    tpu.vector_store %arg5[%c0_17, %c0_18], %27 {strides = array<i32>} : memref<8x128xf32, #tpu.memory_space<vmem>>, vector<8x128xf32>,
    return
  }
}

</mosaic_0001>

<bundles_post_ra>
// kernel: fused_forward.1
= control target key start
LH: loop header
LB: loop body
LE: loop exit
PB: predicated region body
PF: predicated region fallthrough
CT: control target
= control target key end

     0   :  { %10 = vsyncpa [#allocation3], 0  ;;  %s1744_s0 = inlined_call_operand.vmem [shape: f32[8,128], index: 0, kind: input, shape index: {}]   ;;  %s1745_s1 = inlined_call_operand.hbm [shape: bf16[128,512], index: 1, kind: input, shape index: {}]   ;;  %s1746_s2 = inlined_call_operand.hbm [shape: bf16[2,256,256], index: 2, kind: input, shape index: {}]   ;;  %s1747_s3 = inlined_call_operand.hbm [shape: bf16[512,128], index: 3, kind: input, shape index: {}]   ;;  %s1748_s4 = inlined_call_operand.vmem [shape: f32[1,1152], index: 4, kind: input, shape index: {}]   ;;  %s1749_s5 = inlined_call_operand.vmem [shape: f32[8,128], index: 5, kind: output, shape index: {}]  }
   0x1   :  { %11 = vsyncpa [#allocation5], 0  ;;  %s1658_s18 = smov [#allocation4]  }
   0x2   :  { %s31_s19 = sshll.u32 %s1658_s18, 4  ;;  %s32_s19 = int_to_ptr.vmem [resolvable:$true] %s31_s19 }
   0x3   :  { %s1602_s20 = scalar_lea.vmem %s32_s19, 8192  ;;  %p1607_p1 = scmp.lt.s32.totalorder %s32_s19, %s32_s19 }
   0x4   :  { %p1603_p0 = scmp.ne.s32.totalorder %s32_s19, %s1602_s20  ;;  %p1608_p2 = scmp.lt.s32.totalorder %s1602_s20, %s1602_s20 }
   0x6   :  { %p1609_p3 = por %p1608_p2, %p1607_p1 }
   0x8   :  { %p1610_p4 = pnand %p1609_p3, %p1603_p0 }
   0xa   :  { %1613 = shalt.err (!%p1610_p4)
}
   0xb   :  { %s1659_s21 = smov 128   ;;  %s1660_s22 = smov 8  }
   0xc   :  { %37 = dma.hbm_to_vmem [thread:$0]  %s1746_s2, 8192, %s32_s19, [#allocation5], %s1659_s21, %s1659_s21, %s1660_s22  }
   0xd   :  { %s1661_s25 = smov [#allocation2]  }
   0xe   :  { %s19_s26 = sshll.u32 %s1661_s25, 4  ;;  %s20_s26 = int_to_ptr.vmem [resolvable:$true] %s19_s26 }
   0xf   :  { %s1622_s27 = scalar_lea.vmem %s20_s26, 4096  ;;  %p1627_p6 = scmp.lt.s32.totalorder %s20_s26, %s20_s26 }
  0x10   :  { %p1623_p5 = scmp.ne.s32.totalorder %s20_s26, %s1622_s27  ;;  %p1628_p7 = scmp.lt.s32.totalorder %s1622_s27, %s1622_s27 }
  0x12   :  { %p1629_p8 = por %p1628_p7, %p1627_p6 }
  0x14   :  { %p1630_p9 = pnand %p1629_p8, %p1623_p5 }
  0x16   :  { %1633 = shalt.err (!%p1630_p9)
}
  0x17   :  { %s1662_s28 = smov 256   ;;  %s1663_s29 = smov 16  }
  0x18   :  { %25 = dma.hbm_to_vmem [thread:$0]  %s1745_s1, 4096, %s20_s26, [#allocation3], %s1662_s28, %s1662_s28, %s1663_s29  }
  0x19   :  { %s1664_s7 = smov [#allocation6]  }
  0x1a   :  { %s43_s8 = sshll.u32 %s1664_s7, 4  ;;  %s44_s8 = int_to_ptr.vmem [resolvable:$true] %s43_s8 }
  0x1b   :  { %s1642_s2 = scalar_lea.vmem %s44_s8, 4096  ;;  %p1647_p11 = scmp.lt.s32.totalorder %s44_s8, %s44_s8 }
  0x1c   :  { %p1643_p10 = scmp.ne.s32.totalorder %s44_s8, %s1642_s2  ;;  %p1648_p12 = scmp.lt.s32.totalorder %s1642_s2, %s1642_s2 }
  0x1e   :  { %p1649_p13 = por %p1648_p12, %p1647_p11 }
  0x20   :  { %p1650_p0 = pnand %p1649_p13, %p1643_p10 }
  0x22   :  { %1653 = shalt.err (!%p1650_p0)
}
  0x23   :  { %s1665_s9 = smov 64   ;;  %s1666_s10 = smov 4  }
  0x24   :  { %49 = dma.hbm_to_vmem [thread:$0]  %s1747_s3, 4096, %s44_s8, [#allocation5], %s1665_s9, %s1665_s9, %s1666_s10  }
  0x25   :  { %1654 = dma.done.wait [#allocation3], 4096  }
  0x26   :  { %1655 = vsyncadd [#allocation3], 4294963200 }
  0x27   :  { %1656 = dma.done.wait [#allocation5], 12288  }
  0x28   :  { %1657 = vsyncadd [#allocation5], 4294955008  ;;  %v1667_v0 = vmov 0   ;;  %v1402_v1 = vld [vmem:[#allocation2 + $0xe4] ss:$16 sps:$4 sm:$0xff]  }
  0x29   :  { %312 = vmatprep.mubr.bf16.mxu0 %v1667_v0  ;;  %353 = vmatprep.mubr.bf16.mxu1 %v1667_v0  ;;  %v1404_v2 = vld [vmem:[#allocation2 + $0xec] ss:$16 sps:$4 sm:$0xff]   ;;  %v1406_v3 = vld [vmem:[#allocation2 + $0xe0] ss:$16 sps:$4 sm:$0xff]   ;;  %v1407_v4 = vld [vmem:[#allocation2 + $0xe8] ss:$16 sps:$4 sm:$0xff]  }
  0x2a   :  { %280 = vmatprep.subr.bf16.mxu0 %v1402_v1  ;;  %321 = vmatprep.subr.bf16.mxu1 %v1404_v2  ;;  %v1408_v5 = vld [vmem:[#allocation2 + $0xc4] ss:$16 sps:$4 sm:$0xff]   ;;  %v1410_v6 = vld [vmem:[#allocation2 + $0xcc] ss:$16 sps:$4 sm:$0xff]   ;;  %v1412_v7 = vld [vmem:[#allocation2 + $0xc0] ss:$16 sps:$4 sm:$0xff]  }
  0x2b   :  { %281 = vmatpush1.bf16.msra.mxu0 %v1406_v3  ;;  %322 = vmatpush1.bf16.msra.mxu1 %v1407_v4  ;;  %v1413_v8 = vld [vmem:[#allocation2 + $0xc8] ss:$16 sps:$4 sm:$0xff]   ;;  %v1414_v9 = vld [vmem:[#allocation2 + $0xa4] ss:$16 sps:$4 sm:$0xff]   ;;  %v1416_v10 = vld [vmem:[#allocation2 + $0xac] ss:$16 sps:$4 sm:$0xff]  }
  0x2c   :  { %282 = vmatprep.subr.bf16.mxu0 %v1408_v5  ;;  %323 = vmatprep.subr.bf16.mxu1 %v1410_v6  ;;  %v1418_v11 = vld [vmem:[#allocation2 + $0xa0] ss:$16 sps:$4 sm:$0xff]   ;;  %v1419_v12 = vld [vmem:[#allocation2 + $0xa8] ss:$16 sps:$4 sm:$0xff]   ;;  %v1420_v13 = vld [vmem:[#allocation2 + $0x84] ss:$16 sps:$4 sm:$0xff]  }
  0x2d   :  { %v1422_v14 = vld [vmem:[#allocation2 + $0x8c] ss:$16 sps:$4 sm:$0xff]   ;;  %v1424_v15 = vld [vmem:[#allocation2 + $0x80] ss:$16 sps:$4 sm:$0xff]   ;;  %v1425_v16 = vld [vmem:[#allocation2 + $0x88] ss:$16 sps:$4 sm:$0xff]  }
  0x2e   :  { %v1426_v17 = vld [vmem:[#allocation2 + $0x64] ss:$16 sps:$4 sm:$0xff]   ;;  %v1428_v18 = vld [vmem:[#allocation2 + $0x6c] ss:$16 sps:$4 sm:$0xff]   ;;  %v1430_v19 = vld [vmem:[#allocation2 + $0x60] ss:$16 sps:$4 sm:$0xff]  }
  0x2f   :  { %283 = vmatpush1.bf16.msra.mxu0 %v1412_v7  ;;  %324 = vmatpush1.bf16.msra.mxu1 %v1413_v8  ;;  %v1431_v20 = vld [vmem:[#allocation2 + $0x68] ss:$16 sps:$4 sm:$0xff]   ;;  %v1432_v21 = vld [vmem:[#allocation2 + $0x44] ss:$16 sps:$4 sm:$0xff]   ;;  %v1434_v22 = vld [vmem:[#allocation2 + $0x4c] ss:$16 sps:$4 sm:$0xff]  }
  0x30   :  { %284 = vmatprep.subr.bf16.mxu0 %v1414_v9  ;;  %325 = vmatprep.subr.bf16.mxu1 %v1416_v10  ;;  %v1436_v23 = vld [vmem:[#allocation2 + $0x40] ss:$16 sps:$4 sm:$0xff]   ;;  %v1437_v24 = vld [vmem:[#allocation2 + $0x48] ss:$16 sps:$4 sm:$0xff]   ;;  %v1438_v25 = vld [vmem:[#allocation2 + $0x24] ss:$16 sps:$4 sm:$0xff]  }
  0x31   :  { %v1440_v26 = vld [vmem:[#allocation2 + $0x2c] ss:$16 sps:$4 sm:$0xff]   ;;  %v1442_v27 = vld [vmem:[#allocation2 + $0x20] ss:$16 sps:$4 sm:$0xff]   ;;  %v1443_v28 = vld [vmem:[#allocation2 + $0x28] ss:$16 sps:$4 sm:$0xff]  }
  0x32   :  { %v1444_v29 = vld [vmem:[#allocation2 + $0x4] ss:$16 sps:$4 sm:$0xff]   ;;  %v1446_v30 = vld [vmem:[#allocation2 + $0xc] ss:$16 sps:$4 sm:$0xff]   ;;  %v1448_v31 = vld [vmem:[#allocation2] ss:$16 sps:$4 sm:$0xff]  }
  0x33   :  { %285 = vmatpush1.bf16.msra.mxu0 %v1418_v11  ;;  %326 = vmatpush1.bf16.msra.mxu1 %v1419_v12  ;;  %v1449_v32 = vld [vmem:[#allocation2 + $0x8] ss:$16 sps:$4 sm:$0xff]   ;;  %v62_v33 = vld [vmem:[%s1744_s0] sm:$0xff]  ;;  %v1452_v34 = vld [vmem:[#allocation4 + $0x74] ss:$8 sps:$4 sm:$0xff]  }
  0x34   :  { %286 = vmatprep.subr.bf16.mxu0 %v1420_v13  ;;  %327 = vmatprep.subr.bf16.mxu1 %v1422_v14  ;;  %v1455_v35 = vld [vmem:[#allocation4 + $0x174] ss:$8 sps:$4 sm:$0xff]   ;;  %v63_v36 = vpack.c.bf16 %v62_v33, %v62_v33  ;;  %v1450_v37 = vld [vmem:[#allocation4 + $0x70] ss:$8 sps:$4 sm:$0xff]   ;;  %v1458_v39 = vld [vmem:[#allocation4 + $0x64] ss:$8 sps:$4 sm:$0xff]  }
  0x35   :  { %v1453_v38 = vld [vmem:[#allocation4 + $0x170] ss:$8 sps:$4 sm:$0xff]   ;;  %v1461_v40 = vld [vmem:[#allocation4 + $0x164] ss:$8 sps:$4 sm:$0xff]   ;;  %v1456_v41 = vld [vmem:[#allocation4 + $0x60] ss:$8 sps:$4 sm:$0xff]  }
  0x36   :  { %v1459_v42 = vld [vmem:[#allocation4 + $0x160] ss:$8 sps:$4 sm:$0xff]   ;;  %v1464_v43 = vld [vmem:[#allocation4 + $0x54] ss:$8 sps:$4 sm:$0xff]   ;;  %v1462_v45 = vld [vmem:[#allocation4 + $0x50] ss:$8 sps:$4 sm:$0xff]  }
  0x37   :  { %287 = vmatpush1.bf16.msra.mxu0 %v1424_v15  ;;  %328 = vmatpush1.bf16.msra.mxu1 %v1425_v16  ;;  %v1467_v44 = vld [vmem:[#allocation4 + $0x154] ss:$8 sps:$4 sm:$0xff]   ;;  %v1465_v46 = vld [vmem:[#allocation4 + $0x150] ss:$8 sps:$4 sm:$0xff]   ;;  %v1470_v47 = vld [vmem:[#allocation4 + $0x44] ss:$8 sps:$4 sm:$0xff]  }
  0x38   :  { %288 = vmatprep.subr.bf16.mxu0 %v1426_v17  ;;  %329 = vmatprep.subr.bf16.mxu1 %v1428_v18  ;;  %v1473_v48 = vld [vmem:[#allocation4 + $0x144] ss:$8 sps:$4 sm:$0xff]   ;;  %v1468_v49 = vld [vmem:[#allocation4 + $0x40] ss:$8 sps:$4 sm:$0xff]   ;;  %v1476_v51 = vld [vmem:[#allocation4 + $0x34] ss:$8 sps:$4 sm:$0xff]  }
  0x39   :  { %v1471_v50 = vld [vmem:[#allocation4 + $0x140] ss:$8 sps:$4 sm:$0xff]   ;;  %v1479_v52 = vld [vmem:[#allocation4 + $0x134] ss:$8 sps:$4 sm:$0xff]   ;;  %v1474_v53 = vld [vmem:[#allocation4 + $0x30] ss:$8 sps:$4 sm:$0xff]  }
  0x3a   :  { %v1477_v54 = vld [vmem:[#allocation4 + $0x130] ss:$8 sps:$4 sm:$0xff]   ;;  %v1482_v55 = vld [vmem:[#allocation4 + $0x24] ss:$8 sps:$4 sm:$0xff]   ;;  %v1480_v57 = vld [vmem:[#allocation4 + $0x20] ss:$8 sps:$4 sm:$0xff]  }
  0x3b   :  { %289 = vmatpush1.bf16.msra.mxu0 %v1430_v19  ;;  %330 = vmatpush1.bf16.msra.mxu1 %v1431_v20  ;;  %v1485_v56 = vld [vmem:[#allocation4 + $0x124] ss:$8 sps:$4 sm:$0xff]   ;;  %v1483_v58 = vld [vmem:[#allocation4 + $0x120] ss:$8 sps:$4 sm:$0xff]   ;;  %v1488_v59 = vld [vmem:[#allocation4 + $0x14] ss:$8 sps:$4 sm:$0xff]  }
  0x3c   :  { %290 = vmatprep.subr.bf16.mxu0 %v1432_v21  ;;  %331 = vmatprep.subr.bf16.mxu1 %v1434_v22  ;;  %v1491_v60 = vld [vmem:[#allocation4 + $0x114] ss:$8 sps:$4 sm:$0xff]   ;;  %v1486_v61 = vld [vmem:[#allocation4 + $0x10] ss:$8 sps:$4 sm:$0xff]   ;;  %v1494_v63 = vld [vmem:[#allocation4 + $0x4] ss:$8 sps:$4 sm:$0xff]  }
  0x3d   :  { %v1489_v62 = vld [vmem:[#allocation4 + $0x110] ss:$8 sps:$4 sm:$0xff]   ;;  %v1497_v0 = vld [vmem:[#allocation4 + $0x104] ss:$8 sps:$4 sm:$0xff]   ;;  %v1492_v1 = vld [vmem:[#allocation4] ss:$8 sps:$4 sm:$0xff]  }
  0x3e   :  { %v1495_v2 = vld [vmem:[#allocation4 + $0x100] ss:$8 sps:$4 sm:$0xff]   ;;  %v1500_v3 = vld [vmem:[#allocation4 + $0xf4] ss:$8 sps:$4 sm:$0xff]   ;;  %v1498_v5 = vld [vmem:[#allocation4 + $0xf0] ss:$8 sps:$4 sm:$0xff]  }
  0x3f   :  { %291 = vmatpush1.bf16.msra.mxu0 %v1436_v23  ;;  %332 = vmatpush1.bf16.msra.mxu1 %v1437_v24  ;;  %v1503_v4 = vld [vmem:[#allocation4 + $0x1f4] ss:$8 sps:$4 sm:$0xff]   ;;  %v1501_v6 = vld [vmem:[#allocation4 + $0x1f0] ss:$8 sps:$4 sm:$0xff]   ;;  %v1506_v7 = vld [vmem:[#allocation4 + $0xe4] ss:$8 sps:$4 sm:$0xff]  }
  0x40   :  { %292 = vmatprep.subr.bf16.mxu0 %v1438_v25  ;;  %333 = vmatprep.subr.bf16.mxu1 %v1440_v26  ;;  %v1509_v8 = vld [vmem:[#allocation4 + $0x1e4] ss:$8 sps:$4 sm:$0xff]   ;;  %v1504_v9 = vld [vmem:[#allocation4 + $0xe0] ss:$8 sps:$4 sm:$0xff]   ;;  %v1512_v11 = vld [vmem:[#allocation4 + $0xd4] ss:$8 sps:$4 sm:$0xff]  }
  0x41   :  { %v1507_v10 = vld [vmem:[#allocation4 + $0x1e0] ss:$8 sps:$4 sm:$0xff]   ;;  %v1515_v12 = vld [vmem:[#allocation4 + $0x1d4] ss:$8 sps:$4 sm:$0xff]   ;;  %v1510_v13 = vld [vmem:[#allocation4 + $0xd0] ss:$8 sps:$4 sm:$0xff]  }
  0x42   :  { %v1513_v14 = vld [vmem:[#allocation4 + $0x1d0] ss:$8 sps:$4 sm:$0xff]   ;;  %v1518_v15 = vld [vmem:[#allocation4 + $0xc4] ss:$8 sps:$4 sm:$0xff]   ;;  %v1516_v17 = vld [vmem:[#allocation4 + $0xc0] ss:$8 sps:$4 sm:$0xff]  }
  0x43   :  { %293 = vmatpush1.bf16.msra.mxu0 %v1442_v27  ;;  %334 = vmatpush1.bf16.msra.mxu1 %v1443_v28  ;;  %v1521_v16 = vld [vmem:[#allocation4 + $0x1c4] ss:$8 sps:$4 sm:$0xff]   ;;  %v1519_v18 = vld [vmem:[#allocation4 + $0x1c0] ss:$8 sps:$4 sm:$0xff]   ;;  %v1524_v19 = vld [vmem:[#allocation4 + $0xb4] ss:$8 sps:$4 sm:$0xff]  }
  0x44   :  { %294 = vmatprep.subr.bf16.mxu0 %v1444_v29  ;;  %335 = vmatprep.subr.bf16.mxu1 %v1446_v30  ;;  %v1527_v20 = vld [vmem:[#allocation4 + $0x1b4] ss:$8 sps:$4 sm:$0xff]   ;;  %v1522_v21 = vld [vmem:[#allocation4 + $0xb0] ss:$8 sps:$4 sm:$0xff]   ;;  %v1530_v23 = vld [vmem:[#allocation4 + $0xa4] ss:$8 sps:$4 sm:$0xff]  }
  0x45   :  { %v1525_v22 = vld [vmem:[#allocation4 + $0x1b0] ss:$8 sps:$4 sm:$0xff]   ;;  %v1533_v24 = vld [vmem:[#allocation4 + $0x1a4] ss:$8 sps:$4 sm:$0xff]   ;;  %v1528_v25 = vld [vmem:[#allocation4 + $0xa0] ss:$8 sps:$4 sm:$0xff]  }
  0x46   :  { %v1531_v26 = vld [vmem:[#allocation4 + $0x1a0] ss:$8 sps:$4 sm:$0xff]   ;;  %v1536_v27 = vld [vmem:[#allocation4 + $0x94] ss:$8 sps:$4 sm:$0xff]   ;;  %v1534_v29 = vld [vmem:[#allocation4 + $0x90] ss:$8 sps:$4 sm:$0xff]  }
  0x47   :  { %295 = vmatpush1.bf16.msra.mxu0 %v1448_v31  ;;  %336 = vmatpush1.bf16.msra.mxu1 %v1449_v32  ;;  %v1539_v28 = vld [vmem:[#allocation4 + $0x194] ss:$8 sps:$4 sm:$0xff]   ;;  %v1537_v30 = vld [vmem:[#allocation4 + $0x190] ss:$8 sps:$4 sm:$0xff]   ;;  %v1542_v31 = vld [vmem:[#allocation4 + $0x84] ss:$8 sps:$4 sm:$0xff]  }
  0x48   :  { %562 = vmatprep.subr.bf16.mxu0 %v1452_v34  ;;  %796 = vmatprep.subr.bf16.mxu1 %v1455_v35  ;;  %v1545_v32 = vld [vmem:[#allocation4 + $0x184] ss:$8 sps:$4 sm:$0xff]   ;;  %v1540_v33 = vld [vmem:[#allocation4 + $0x80] ss:$8 sps:$4 sm:$0xff]   ;;  %v1546_v35 = vld [vmem:[#allocation6 + $0x78] sm:$0xff]  }
  0x49   :  { %v1543_v34 = vld [vmem:[#allocation4 + $0x180] ss:$8 sps:$4 sm:$0xff]  }
  0x4a   :  { %313 = vmatmul.mubr.bf16.vlgmr.msra.gmra.mxu0 %v63_v36  ;;  %354 = vmatmul.mubr.bf16.vlgmr.msra.gmra.mxu1 %v63_v36  ;;  %v1547_v36 = vld [vmem:[#allocation6 + $0xf8] sm:$0xff]  }
  0x4b   :  { %563 = vmatpush1.bf16.msra.mxu0 %v1450_v37  ;;  %797 = vmatpush1.bf16.msra.mxu1 %v1453_v38  ;;  %v100_v37 = vlaneseq }
  0x4c   :  { %564 = vmatprep.subr.bf16.mxu0 %v1458_v39  ;;  %798 = vmatprep.subr.bf16.mxu1 %v1461_v40 }
  0x4d   :  { %v1710_v38 = vshrl.u32 %v100_v37, 7 }
  0x4f   :  { %565 = vmatpush1.bf16.msra.mxu0 %v1456_v41  ;;  %799 = vmatpush1.bf16.msra.mxu1 %v1459_v42  ;;  %v102_v39 = vsub.s32 0, %v1710_v38  ;;  %v110_v40 = vsub.s32 2, %v1710_v38  ;;  %v64_v41 = vld [vmem:[%s1748_s4] sm:$0xf]  ;;  %v106_v42 = vsub.s32 1, %v1710_v38 }
  0x50   :  { %566 = vmatprep.subr.bf16.mxu0 %v1464_v43  ;;  %800 = vmatprep.subr.bf16.mxu1 %v1467_v44  ;;  %v114_v43 = vsub.s32 3, %v1710_v38 }
  0x51   :  { %v103_v44 = vrot.slane %v64_v41, %v102_v39 }
  0x53   :  { %567 = vmatpush1.bf16.msra.mxu0 %v1462_v45  ;;  %801 = vmatpush1.bf16.msra.mxu1 %v1465_v46  ;;  %v111_v45 = vrot.slane %v64_v41, %v110_v40  ;;  %v107_v46 = vrot.slane %v64_v41, %v106_v42 }
  0x54   :  { %568 = vmatprep.subr.bf16.mxu0 %v1470_v47  ;;  %802 = vmatprep.subr.bf16.mxu1 %v1473_v48  ;;  %v115_v47 = vrot.slane %v64_v41, %v114_v43 }
  0x57   :  { %569 = vmatpush1.bf16.msra.mxu0 %v1468_v49  ;;  %803 = vmatpush1.bf16.msra.mxu1 %v1471_v50 }
  0x58   :  { %570 = vmatprep.subr.bf16.mxu0 %v1476_v51  ;;  %804 = vmatprep.subr.bf16.mxu1 %v1479_v52 }
  0x5b   :  { %571 = vmatpush1.bf16.msra.mxu0 %v1474_v53  ;;  %805 = vmatpush1.bf16.msra.mxu1 %v1477_v54 }
  0x5c   :  { %572 = vmatprep.subr.bf16.mxu0 %v1482_v55  ;;  %806 = vmatprep.subr.bf16.mxu1 %v1485_v56 }
  0x5f   :  { %573 = vmatpush1.bf16.msra.mxu0 %v1480_v57  ;;  %807 = vmatpush1.bf16.msra.mxu1 %v1483_v58 }
  0x60   :  { %574 = vmatprep.subr.bf16.mxu0 %v1488_v59  ;;  %808 = vmatprep.subr.bf16.mxu1 %v1491_v60 }
  0x63   :  { %575 = vmatpush1.bf16.msra.mxu0 %v1486_v61  ;;  %809 = vmatpush1.bf16.msra.mxu1 %v1489_v62 }
  0x64   :  { %576 = vmatprep.subr.bf16.mxu0 %v1494_v63  ;;  %810 = vmatprep.subr.bf16.mxu1 %v1497_v0 }
  0x67   :  { %577 = vmatpush1.bf16.msra.mxu0 %v1492_v1  ;;  %811 = vmatpush1.bf16.msra.mxu1 %v1495_v2  ;;  %v1548_v2 = vld [vmem:[#allocation6 + $0x38] sm:$0xff]  }
  0x68   :  { %578 = vmatprep.subr.bf16.mxu0 %v1500_v3  ;;  %812 = vmatprep.subr.bf16.mxu1 %v1503_v4 }
  0x6b   :  { %579 = vmatpush2.bf16.msra.mxu0 %v1498_v5  ;;  %813 = vmatpush2.bf16.msra.mxu1 %v1501_v6  ;;  %v1549_v5 = vld [vmem:[#allocation6 + $0xb8] sm:$0xff]   ;;  %v1550_v6 = vld [vmem:[#allocation6 + $0x70] sm:$0xff]  }
  0x6c   :  { %580 = vmatprep.subr.bf16.mxu0 %v1506_v7  ;;  %814 = vmatprep.subr.bf16.mxu1 %v1509_v8  ;;  %v1551_v7 = vld [vmem:[#allocation6 + $0xf0] sm:$0xff]  }
  0x6d   :  { %v1552_v8 = vld [vmem:[#allocation6 + $0x30] sm:$0xff]  }
  0x6f   :  { %581 = vmatpush2.bf16.msra.mxu0 %v1504_v9  ;;  %815 = vmatpush2.bf16.msra.mxu1 %v1507_v10  ;;  %v1553_v9 = vld [vmem:[#allocation6 + $0xb0] sm:$0xff]   ;;  %v1554_v10 = vld [vmem:[#allocation6 + $0x68] sm:$0xff]  }
  0x70   :  { %582 = vmatprep.subr.bf16.mxu0 %v1512_v11  ;;  %816 = vmatprep.subr.bf16.mxu1 %v1515_v12  ;;  %v1555_v11 = vld [vmem:[#allocation6 + $0xe8] sm:$0xff]  }
  0x71   :  { %v1556_v12 = vld [vmem:[#allocation6 + $0x28] sm:$0xff]  }
  0x73   :  { %583 = vmatpush2.bf16.msra.mxu0 %v1510_v13  ;;  %817 = vmatpush2.bf16.msra.mxu1 %v1513_v14  ;;  %v1557_v13 = vld [vmem:[#allocation6 + $0xa8] sm:$0xff]   ;;  %v1558_v14 = vld [vmem:[#allocation6 + $0x60] sm:$0xff]  }
  0x74   :  { %584 = vmatprep.subr.bf16.mxu0 %v1518_v15  ;;  %818 = vmatprep.subr.bf16.mxu1 %v1521_v16  ;;  %v1559_v15 = vld [vmem:[#allocation6 + $0xe0] sm:$0xff]  }
  0x75   :  { %v1560_v16 = vld [vmem:[#allocation6 + $0x20] sm:$0xff]  }
  0x77   :  { %585 = vmatpush2.bf16.msra.mxu0 %v1516_v17  ;;  %819 = vmatpush2.bf16.msra.mxu1 %v1519_v18  ;;  %v1561_v17 = vld [vmem:[#allocation6 + $0xa0] sm:$0xff]   ;;  %v1562_v18 = vld [vmem:[#allocation6 + $0x58] sm:$0xff]  }
  0x78   :  { %586 = vmatprep.subr.bf16.mxu0 %v1524_v19  ;;  %820 = vmatprep.subr.bf16.mxu1 %v1527_v20  ;;  %v1563_v19 = vld [vmem:[#allocation6 + $0xd8] sm:$0xff]  }
  0x79   :  { %v1564_v20 = vld [vmem:[#allocation6 + $0x18] sm:$0xff]  }
  0x7b   :  { %587 = vmatpush2.bf16.msra.mxu0 %v1522_v21  ;;  %821 = vmatpush2.bf16.msra.mxu1 %v1525_v22  ;;  %v1565_v21 = vld [vmem:[#allocation6 + $0x98] sm:$0xff]   ;;  %v1566_v22 = vld [vmem:[#allocation6 + $0x50] sm:$0xff]  }
  0x7c   :  { %588 = vmatprep.subr.bf16.mxu0 %v1530_v23  ;;  %822 = vmatprep.subr.bf16.mxu1 %v1533_v24  ;;  %v1567_v23 = vld [vmem:[#allocation6 + $0xd0] sm:$0xff]  }
  0x7d   :  { %v1568_v24 = vld [vmem:[#allocation6 + $0x10] sm:$0xff]  }
  0x7f   :  { %589 = vmatpush2.bf16.msra.mxu0 %v1528_v25  ;;  %823 = vmatpush2.bf16.msra.mxu1 %v1531_v26  ;;  %v1569_v25 = vld [vmem:[#allocation6 + $0x90] sm:$0xff]   ;;  %v1570_v26 = vld [vmem:[#allocation6 + $0x48] sm:$0xff]  }
  0x80   :  { %590 = vmatprep.subr.bf16.mxu0 %v1536_v27  ;;  %824 = vmatprep.subr.bf16.mxu1 %v1539_v28  ;;  %v1571_v27 = vld [vmem:[#allocation6 + $0xc8] sm:$0xff]  }
  0x81   :  { %v1572_v28 = vld [vmem:[#allocation6 + $0x8] sm:$0xff]  }
  0x83   :  { %591 = vmatpush2.bf16.msra.mxu0 %v1534_v29  ;;  %825 = vmatpush2.bf16.msra.mxu1 %v1537_v30  ;;  %v1573_v29 = vld [vmem:[#allocation6 + $0x88] sm:$0xff]   ;;  %v1574_v30 = vld [vmem:[#allocation6 + $0x40] sm:$0xff]  }
  0x84   :  { %592 = vmatprep.subr.bf16.mxu0 %v1542_v31  ;;  %826 = vmatprep.subr.bf16.mxu1 %v1545_v32  ;;  %v1575_v31 = vld [vmem:[#allocation6 + $0xc0] sm:$0xff]  }
  0x85   :  { %v1576_v32 = vld [vmem:[#allocation6] sm:$0xff]  }
  0x87   :  { %593 = vmatpush2.bf16.msra.mxu0 %v1540_v33  ;;  %827 = vmatpush2.bf16.msra.mxu1 %v1543_v34  ;;  %v1577_v33 = vld [vmem:[#allocation6 + $0x80] sm:$0xff]  }
  0x88   :  { %1348 = vmatprep.subr.bf16.mxu0 %v1546_v35  ;;  %1370 = vmatprep.subr.bf16.mxu1 %v1547_v36  ;;  %v65_v34 = vld [vmem:[%s1748_s4 + $0x4] sm:$0xf] }
  0x89   :  { %v841_v35 = vrot.slane %v65_v34, %v102_v39  ;;  %v849_v36 = vrot.slane %v65_v34, %v110_v40  ;;  %v845_v37 = vrot.slane %v65_v34, %v106_v42 }
 0x10a   :  { %v314_v48 = vpop.f32.mrf.mxu0  ;;  %v355_v49 = vpop.f32.mrf.mxu1 }
 0x10b   :  { %v315_v50 = vadd.f32 %v314_v48, %v103_v44  ;;  %v356_v51 = vadd.f32 %v355_v49, %v111_v45  ;;  %v853_v44 = vrot.slane %v65_v34, %v114_v43 }
 0x10c   :  { %v316_v52 = vpop.f32.mrf.mxu0  ;;  %v357_v53 = vpop.f32.mrf.mxu1 }
 0x10d   :  { %1578 = vtanh.f32 %v315_v50  ;;  %v317_v54 = vadd.f32 %v316_v52, %v107_v46  ;;  %v358_v55 = vadd.f32 %v357_v53, %v115_v47 }
 0x10e   :  { %1580 = vtanh.f32 %v356_v51  ;;  %v318_v56 = vpop.f32.mrf.mxu0  ;;  %v359_v57 = vpop.f32.mrf.mxu1 }
 0x10f   :  { %1582 = vtanh.f32 %v317_v54 }
 0x110   :  { %1584 = vtanh.f32 %v358_v55  ;;  %v319_v58 = vpop.f32.mrf.mxu0  ;;  %v360_v59 = vpop.f32.mrf.mxu1 }
 0x11a   :  { %v1579_v60 = vpop.eup %1578 }
 0x11b   :  { %v1581_v61 = vpop.eup %1580  ;;  %v366_v3 = vpack.c.bf16 %v1579_v60, %v1579_v60 }
 0x11c   :  { %v1583_v62 = vpop.eup %1582  ;;  %v368_v0 = vpack.c.bf16 %v1581_v61, %v1581_v61  ;;  %v1315_v61 = vld [vmem:[%s1748_s4 + $0x8] ss:$0 sm:$0xff] }
 0x11d   :  { %v1585_v63 = vpop.eup %1584  ;;  %v367_v1 = vpack.c.bf16 %v1583_v62, %v1583_v62 }
 0x11e   :  { %v369_v4 = vpack.c.bf16 %v1585_v63, %v1585_v63 }
 0x11f   :  { %594 = vmatprep.mubr.bf16.mxu0 %v367_v1 }
 0x120   :  { %828 = vmatprep.mubr.bf16.mxu1 %v369_v4  ;;  %595 = vmatmul.mubr.bf16.vlgmr.msra.gmra.mxu0 %v366_v3 }
 0x121   :  { %829 = vmatmul.mubr.bf16.vlgmr.msra.gmra.mxu1 %v368_v0  ;;  %1349 = vmatpush3.bf16.msra.mxu0 %v1548_v2 }
 0x122   :  { %1371 = vmatpush3.bf16.msra.mxu1 %v1549_v5  ;;  %1350 = vmatprep.subr.bf16.mxu0 %v1550_v6 }
 0x123   :  { %1372 = vmatprep.subr.bf16.mxu1 %v1551_v7 }
 0x125   :  { %1351 = vmatpush3.bf16.msra.mxu0 %v1552_v8 }
 0x126   :  { %1373 = vmatpush3.bf16.msra.mxu1 %v1553_v9  ;;  %1352 = vmatprep.subr.bf16.mxu0 %v1554_v10 }
 0x127   :  { %1374 = vmatprep.subr.bf16.mxu1 %v1555_v11 }
 0x129   :  { %1353 = vmatpush3.bf16.msra.mxu0 %v1556_v12 }
 0x12a   :  { %1375 = vmatpush3.bf16.msra.mxu1 %v1557_v13  ;;  %1354 = vmatprep.subr.bf16.mxu0 %v1558_v14 }
 0x12b   :  { %1376 = vmatprep.subr.bf16.mxu1 %v1559_v15 }
 0x12d   :  { %1355 = vmatpush3.bf16.msra.mxu0 %v1560_v16 }
 0x12e   :  { %1377 = vmatpush3.bf16.msra.mxu1 %v1561_v17  ;;  %1356 = vmatprep.subr.bf16.mxu0 %v1562_v18 }
 0x12f   :  { %1378 = vmatprep.subr.bf16.mxu1 %v1563_v19 }
 0x131   :  { %1357 = vmatpush3.bf16.msra.mxu0 %v1564_v20 }
 0x132   :  { %1379 = vmatpush3.bf16.msra.mxu1 %v1565_v21  ;;  %1358 = vmatprep.subr.bf16.mxu0 %v1566_v22 }
 0x133   :  { %1380 = vmatprep.subr.bf16.mxu1 %v1567_v23 }
 0x135   :  { %1359 = vmatpush3.bf16.msra.mxu0 %v1568_v24 }
 0x136   :  { %1381 = vmatpush3.bf16.msra.mxu1 %v1569_v25  ;;  %1360 = vmatprep.subr.bf16.mxu0 %v1570_v26 }
 0x137   :  { %1382 = vmatprep.subr.bf16.mxu1 %v1571_v27 }
 0x139   :  { %1361 = vmatpush3.bf16.msra.mxu0 %v1572_v28 }
 0x13a   :  { %1383 = vmatpush3.bf16.msra.mxu1 %v1573_v29  ;;  %1362 = vmatprep.subr.bf16.mxu0 %v1574_v30 }
 0x13b   :  { %1384 = vmatprep.subr.bf16.mxu1 %v1575_v31 }
 0x13d   :  { %1363 = vmatpush3.bf16.msra.mxu0 %v1576_v32 }
 0x13e   :  { %1385 = vmatpush3.bf16.msra.mxu1 %v1577_v33 }
 0x1e0   :  { %v596_v41 = vpop.f32.mrf.mxu0 }
 0x1e1   :  { %v858_v45 = vadd.f32 %v841_v35, %v596_v41  ;;  %v830_v46 = vpop.f32.mrf.mxu1 }
 0x1e2   :  { %v860_v47 = vadd.f32 %v849_v36, %v830_v46  ;;  %v598_v48 = vpop.f32.mrf.mxu0 }
 0x1e3   :  { %1586 = vtanh.f32 %v858_v45  ;;  %v859_v49 = vadd.f32 %v845_v37, %v598_v48  ;;  %v832_v50 = vpop.f32.mrf.mxu1 }
 0x1e4   :  { %1588 = vtanh.f32 %v860_v47  ;;  %v861_v51 = vadd.f32 %v853_v44, %v832_v50  ;;  %v600_v39 = vpop.f32.mrf.mxu0 }
 0x1e5   :  { %1590 = vtanh.f32 %v859_v49  ;;  %v834_v52 = vpop.f32.mrf.mxu1 }
 0x1e6   :  { %1592 = vtanh.f32 %v861_v51  ;;  %v601_v40 = vpop.f32.mrf.mxu0 }
 0x1e7   :  { %v835_v53 = vpop.f32.mrf.mxu1 }
 0x1f0   :  { %v1587_v42 = vpop.eup %1586 }
 0x1f1   :  { %v1589_v54 = vpop.eup %1588  ;;  %v866_v56 = vpack.c.bf16 %v1587_v42, %v1587_v42 }
 0x1f2   :  { %v1591_v55 = vpop.eup %1590  ;;  %v868_v58 = vpack.c.bf16 %v1589_v54, %v1589_v54 }
 0x1f3   :  { %v1593_v38 = vpop.eup %1592  ;;  %v867_v43 = vpack.c.bf16 %v1591_v55, %v1591_v55 }
 0x1f4   :  { %v869_v57 = vpack.c.bf16 %v1593_v38, %v1593_v38 }
 0x1f5   :  { %1164 = vmatprep.mubr.bf16.mxu0 %v867_v43 }
 0x1f6   :  { %1204 = vmatprep.mubr.bf16.mxu1 %v869_v57  ;;  %1165 = vmatmul.mubr.bf16.vlgmr.msra.gmra.mxu0 %v866_v56 }
 0x1f7   :  { %1205 = vmatmul.mubr.bf16.vlgmr.msra.gmra.mxu1 %v868_v58 }
 0x2b6   :  { %v1364_v59 = vpop.f32.mrf.mxu0 }
 0x2b7   :  { %v1386_v60 = vpop.f32.mrf.mxu1 }
 0x2b8   :  { %v1365_v62 = vpop.f32.mrf.mxu0 }
 0x2b9   :  { %v1366_v63 = vadd.f32 %v1365_v62, %v1364_v59  ;;  %v1387_v0 = vpop.f32.mrf.mxu1 }
 0x2ba   :  { %v1367_v1 = vpop.f32.mrf.mxu0  ;;  %v1388_v3 = vadd.f32 %v1387_v0, %v1386_v60 }
 0x2bb   :  { %v1167_v2 = vadd.f32 %v1366_v63, %v1315_v61  ;;  %v1389_v4 = vpop.f32.mrf.mxu1 }
 0x2bc   :  { %v1368_v5 = vpop.f32.mrf.mxu0 }
 0x2bd   :  { %v1207_v6 = vadd.f32 %v1388_v3, %v1167_v2  ;;  %v1390_v7 = vpop.f32.mrf.mxu1 }
 0x2bf   :  { %1212 = vst [vmem:[%s1749_s5] sm:$0xff] %v1207_v6 }
 0x2c0   :  { %1217 = vsyncpa [#allocation3], 1 }
 0x2c1   :  { %1218 = vsyncpa [#allocation5], 1 }

</bundles_post_ra>
